<compile_context>
chip_gen: v5e
topology: v5e:2x2
jax: 0.10.0
libtpu: 0.0.40
codegen_flags: <defaults>
</compile_context>

<pallas_src>
import functools
import math

import numpy as np
import jax
import jax.numpy as jnp
from jax.experimental import pallas as pl
from jax.experimental.pallas import tpu as pltpu


def _fused_kernel(meta_ref, xt_ref, rt_ref, xe_ref, re_ref, w_ref, p_ref,
                  o_ref, *, eps):
    """One grid step = one [TM, H] row-tile of the concatenated output.

    meta_ref (SMEM, int32[4, G]) per step g:
      [0, g]: branch id (0 = token, 1 = entity)
      [1, g]: block index into the flattened token inputs (clamped when unused)
      [2, g]: block index into the flattened entity inputs (clamped when unused)
      [3, g]: block index into the flattened concatenated output
    """
    g = pl.program_id(0)
    is_token = meta_ref[0, g] == 0

    # Pick this step's input tile. The unused stream's block index is clamped
    # in `meta`, so Pallas skips its DMA; the select is a cheap VMEM read +
    # vselect compared to the matmul.
    x = jnp.where(is_token, xt_ref[...], xe_ref[...])
    res = jnp.where(is_token, rt_ref[...], re_ref[...]).astype(jnp.float32)

    # y = x @ W^T with W in PyTorch [out, in] layout: contract both last dims
    # (no wrapper transpose). Operands stay in their native dtype (bf16 feeds
    # the MXU as bf16); accumulate in f32.
    w = w_ref[0]                                              # [H, H]
    y = jax.lax.dot_general(x, w, (((1,), (1,)), ((), ())),
                            preferred_element_type=jnp.float32)

    p = p_ref[0].astype(jnp.float32)                          # [3, H]
    bias, gamma, beta = p[0:1, :], p[1:2, :], p[2:3, :]

    # Dropout is identity in eval mode.
    # TODO(synk): training-mode dropout (pltpu.prng_seed / prng_random_bits mask).
    z = y + bias + res

    # One-pass LayerNorm statistics, all in f32.
    inv_h = jnp.float32(1.0 / z.shape[-1])
    mean = jnp.sum(z, axis=-1, keepdims=True) * inv_h
    mean_sq = jnp.sum(z * z, axis=-1, keepdims=True) * inv_h
    var = mean_sq - mean * mean
    zn = (z - mean) * jax.lax.rsqrt(var + eps)
    o_ref[...] = (zn * gamma + beta).astype(o_ref.dtype)


def _pick_tile_rows(requested, s_tok, s_ent):
    """Largest row-tile <= `requested` that divides both segment lengths (so no
    tile straddles the token/entity boundary in the concatenated output),
    preferring sublane-friendly multiples of 8."""
    g = math.gcd(s_tok, s_ent)
    cap = max(1, min(requested, g))
    divs = [d for d in range(1, cap + 1) if g % d == 0]
    mult8 = [d for d in divs if d % 8 == 0]
    return max(mult8) if mult8 else max(divs)


def entity_aware_bert_self_output(params,
                                  token_self_output, entity_self_output,
                                  token_hidden_states, entity_hidden_states,
                                  *, eps=1e-12, entity_aware_selfout=True,
                                  tile_rows=256):
    B, S_tok, H = token_self_output.shape
    _, S_ent, _ = entity_self_output.shape
    S_total = S_tok + S_ent
    out_dtype = token_self_output.dtype

    # Branch-stacked parameters: weights [2, H, H], (bias, gamma, beta) [2, 3, H].
    tok_p = jnp.stack([params["dense_b"], params["ln_g"], params["ln_b"]])
    if entity_aware_selfout:
        w2 = jnp.stack([params["dense_w"], params["entity_dense_w"]])
        ent_p = jnp.stack([params["entity_dense_b"],
                           params["entity_ln_g"], params["entity_ln_b"]])
    else:
        w2 = jnp.stack([params["dense_w"], params["dense_w"]])
        ent_p = tok_p
    p2 = jnp.stack([tok_p, ent_p])

    tm = _pick_tile_rows(tile_rows, S_tok, S_ent)
    tiles_tok, tiles_ent = S_tok // tm, S_ent // tm
    tiles_per_b = tiles_tok + tiles_ent
    G = B * tiles_per_b

    # Host-side static schedule. Unused-stream block indices carry the last
    # value so their DMA is not re-issued.
    meta = np.zeros((4, G), np.int32)
    last_tok = last_ent = 0
    g = 0
    for b in range(B):
        for t in range(tiles_tok):
            last_tok = b * tiles_tok + t
            meta[:, g] = (0, last_tok, last_ent, b * tiles_per_b + t)
            g += 1
        for t in range(tiles_ent):
            last_ent = b * tiles_ent + t
            meta[:, g] = (1, last_tok, last_ent, b * tiles_per_b + tiles_tok + t)
            g += 1
    meta = jnp.asarray(meta)

    xt = token_self_output.reshape(B * S_tok, H)
    rt = token_hidden_states.reshape(B * S_tok, H)
    xe = entity_self_output.reshape(B * S_ent, H)
    re = entity_hidden_states.reshape(B * S_ent, H)

    in_bytes = jnp.dtype(out_dtype).itemsize
    w_bytes = jnp.dtype(w2.dtype).itemsize
    # Double-buffered VMEM footprint: 4 input tiles + 1 output tile + weight
    # block + packed params.
    needed = (5 * 2 * tm * H * in_bytes
              + 2 * H * H * w_bytes
              + 2 * 3 * max(H, 128) * 4)
    vmem_limit = None
    if needed > 24 * (1 << 20):
        # TODO(synk): generation-aware cap (v7x has 64 MiB physical VMEM per core).
        vmem_limit = int(min(needed + (8 << 20), 100 << 20))

    rows_total = B * S_total
    cost = pl.CostEstimate(
        flops=2 * rows_total * H * H + 10 * rows_total * H,
        transcendentals=rows_total,
        bytes_accessed=int((2 * (xt.size + xe.size) + rows_total * H) * in_bytes
                           + w2.size * w_bytes
                           + p2.size * jnp.dtype(p2.dtype).itemsize),
    )

    out = pl.pallas_call(
        functools.partial(_fused_kernel, eps=eps),
        out_shape=jax.ShapeDtypeStruct((rows_total, H), out_dtype),
        grid_spec=pltpu.PrefetchScalarGridSpec(
            num_scalar_prefetch=1,
            grid=(G,),
            in_specs=[
                pl.BlockSpec((tm, H), lambda g, m: (m[1, g], 0)),       # token x
                pl.BlockSpec((tm, H), lambda g, m: (m[1, g], 0)),       # token residual
                pl.BlockSpec((tm, H), lambda g, m: (m[2, g], 0)),       # entity x
                pl.BlockSpec((tm, H), lambda g, m: (m[2, g], 0)),       # entity residual
                pl.BlockSpec((1, H, H), lambda g, m: (m[0, g], 0, 0)),  # branch weights
                pl.BlockSpec((1, 3, H), lambda g, m: (m[0, g], 0, 0)),  # bias/gamma/beta
            ],
            out_specs=pl.BlockSpec((tm, H), lambda g, m: (m[3, g], 0)),
        ),
        compiler_params=pltpu.CompilerParams(
            dimension_semantics=("parallel",),
            vmem_limit_bytes=vmem_limit),
        cost_estimate=cost,
    )(meta, xt, rt, xe, re, w2, p2)

    return out.reshape(B, S_total, H)


def _reference(params, t_so, e_so, t_hs, e_hs, eps=1e-12,
               entity_aware_selfout=True):
    """Pure-JAX reference (two-pass LayerNorm, explicit concat)."""
    def branch(x, res, w, b, g, be):
        y = x @ w.T + b
        z = y + res
        mean = jnp.mean(z, -1, keepdims=True)
        var = jnp.mean((z - mean) ** 2, -1, keepdims=True)
        return (z - mean) * jax.lax.rsqrt(var + eps) * g + be

    t = branch(t_so, t_hs, params["dense_w"], params["dense_b"],
               params["ln_g"], params["ln_b"])
    if entity_aware_selfout:
        e = branch(e_so, e_hs, params["entity_dense_w"], params["entity_dense_b"],
                   params["entity_ln_g"], params["entity_ln_b"])
    else:
        e = branch(e_so, e_hs, params["dense_w"], params["dense_b"],
                   params["ln_g"], params["ln_b"])
    return jnp.concatenate([t, e], axis=1)


if __name__ == "__main__":
    B, S_TOK, S_ENT, H = 2, 16, 8, 32
    key = jax.random.PRNGKey(0)
    ks = jax.random.split(key, 8)

    params = {
        "dense_w": jax.random.normal(ks[0], (H, H), jnp.float32) * 0.02,
        "dense_b": jax.random.normal(ks[1], (H,), jnp.float32) * 0.02,
        "ln_g": jnp.ones((H,), jnp.float32),
        "ln_b": jnp.zeros((H,), jnp.float32),
        "entity_dense_w": jax.random.normal(ks[2], (H, H), jnp.float32) * 0.02,
        "entity_dense_b": jax.random.normal(ks[3], (H,), jnp.float32) * 0.02,
        "entity_ln_g": jnp.ones((H,), jnp.float32),
        "entity_ln_b": jnp.zeros((H,), jnp.float32),
    }

    token_self_output = jax.random.normal(ks[4], (B, S_TOK, H), jnp.float32)
    entity_self_output = jax.random.normal(ks[5], (B, S_ENT, H), jnp.float32)
    token_hidden_states = jax.random.normal(ks[6], (B, S_TOK, H), jnp.float32)
    entity_hidden_states = jax.random.normal(ks[7], (B, S_ENT, H), jnp.float32)

    out = entity_aware_bert_self_output(
        params, token_self_output, entity_self_output,
        token_hidden_states, entity_hidden_states)
    out = jax.block_until_ready(out)

    ref = _reference(params, token_self_output, entity_self_output,
                     token_hidden_states, entity_hidden_states)
    assert out.shape == (B, S_TOK + S_ENT, H), out.shape
    assert jnp.allclose(out, ref, atol=3e-5, rtol=3e-5), "mismatch vs reference"

    # Also exercise the entity_aware_selfout=False branch (shared params).
    out2 = jax.block_until_ready(entity_aware_bert_self_output(
        params, token_self_output, entity_self_output,
        token_hidden_states, entity_hidden_states,
        entity_aware_selfout=False))
    ref2 = _reference(params, token_self_output, entity_self_output,
                      token_hidden_states, entity_hidden_states,
                      entity_aware_selfout=False)
    assert jnp.allclose(out2, ref2, atol=3e-5, rtol=3e-5), "mismatch (shared branch)"

    print("KERNEL_OK")
</pallas_src>

<mosaic_0001>
module attributes {stable_mosaic.version = 11 : i64} {
  func.func @_fused_kernel(%arg0: i32, %arg1: memref<4x6xi32, #tpu.memory_space<smem>>, %arg2: memref<8x32xf32, #tpu.memory_space<vmem>>, %arg3: memref<8x32xf32, #tpu.memory_space<vmem>>, %arg4: memref<8x32xf32, #tpu.memory_space<vmem>>, %arg5: memref<8x32xf32, #tpu.memory_space<vmem>>, %arg6: memref<1x32x32xf32, #tpu.memory_space<vmem>>, %arg7: memref<1x3x32xf32, #tpu.memory_space<vmem>>, %arg8: memref<8x32xf32, #tpu.memory_space<vmem>>) attributes {dimension_semantics = [#tpu.dimension_semantics<parallel>], iteration_bounds = array<i64: 6>, scalar_prefetch = 1 : i64, scratch_operands = 0 : i64, tpu.core_type = #tpu.core_type<tc>, window_params = [{transform_indices = @transform_0, window_bounds = array<i64: 8, 32>}, {transform_indices = @transform_1, window_bounds = array<i64: 8, 32>}, {transform_indices = @transform_2, window_bounds = array<i64: 8, 32>}, {transform_indices = @transform_3, window_bounds = array<i64: 8, 32>}, {transform_indices = @transform_4, window_bounds = array<i64: 1, 32, 32>}, {transform_indices = @transform_5, window_bounds = array<i64: 1, 3, 32>}, {transform_indices = @transform_6, window_bounds = array<i64: 8, 32>}]} {
    %c0 = arith.constant 0 : index
    %0 = arith.index_cast %arg0 : i32 to index
    %1 = memref.load %arg1[%c0, %0] : memref<4x6xi32, #tpu.memory_space<smem>>
    %c0_i32 = arith.constant 0 : i32
    %2 = arith.cmpi eq, %1, %c0_i32 : i32
    %c0_0 = arith.constant 0 : index
    %c0_1 = arith.constant 0 : index
    %3 = vector.load %arg2[%c0_0, %c0_1] : memref<8x32xf32, #tpu.memory_space<vmem>>, vector<8x32xf32>
    %c0_2 = arith.constant 0 : index
    %c0_3 = arith.constant 0 : index
    %4 = vector.load %arg4[%c0_2, %c0_3] : memref<8x32xf32, #tpu.memory_space<vmem>>, vector<8x32xf32>
    %5 = arith.select %2, %3, %4 : vector<8x32xf32>
    %c0_4 = arith.constant 0 : index
    %c0_5 = arith.constant 0 : index
    %6 = vector.load %arg3[%c0_4, %c0_5] : memref<8x32xf32, #tpu.memory_space<vmem>>, vector<8x32xf32>
    %c0_6 = arith.constant 0 : index
    %c0_7 = arith.constant 0 : index
    %7 = vector.load %arg5[%c0_6, %c0_7] : memref<8x32xf32, #tpu.memory_space<vmem>>, vector<8x32xf32>
    %8 = arith.select %2, %6, %7 : vector<8x32xf32>
    %c0_8 = arith.constant 0 : index
    %c0_9 = arith.constant 0 : index
    %c0_10 = arith.constant 0 : index
    %9 = vector.load %arg6[%c0_8, %c0_9, %c0_10] : memref<1x32x32xf32, #tpu.memory_space<vmem>>, vector<1x32x32xf32>
    %10 = vector.shape_cast %9 : vector<1x32x32xf32> to vector<32x32xf32>
    %cst = arith.constant dense<0.000000e+00> : vector<8x32xf32>
    %11 = tpu.matmul %5, %10, %cst {dimension_numbers = #tpu.dot_dimension_numbers<[1], [1], [0], [0], [0, 0, 1, 0], [], []>} : vector<8x32xf32>, vector<32x32xf32>, vector<8x32xf32> -> vector<8x32xf32>
    %c0_11 = arith.constant 0 : index
    %c0_12 = arith.constant 0 : index
    %c0_13 = arith.constant 0 : index
    %12 = vector.load %arg7[%c0_11, %c0_12, %c0_13] : memref<1x3x32xf32, #tpu.memory_space<vmem>>, vector<1x3x32xf32>
    %13 = vector.shape_cast %12 : vector<1x3x32xf32> to vector<3x32xf32>
    %14 = vector.extract_strided_slice %13 {offsets = [0, 0], sizes = [1, 32], strides = [1, 1]} : vector<3x32xf32> to vector<1x32xf32>
    %15 = vector.extract_strided_slice %13 {offsets = [1, 0], sizes = [1, 32], strides = [1, 1]} : vector<3x32xf32> to vector<1x32xf32>
    %16 = vector.extract_strided_slice %13 {offsets = [2, 0], sizes = [1, 32], strides = [1, 1]} : vector<3x32xf32> to vector<1x32xf32>
    %17 = vector.broadcast %14 : vector<1x32xf32> to vector<8x32xf32>
    %18 = arith.addf %11, %17 : vector<8x32xf32>
    %19 = arith.addf %18, %8 : vector<8x32xf32>
    %cst_14 = arith.constant dense<0.000000e+00> : vector<8xf32>
    %20 = vector.multi_reduction <add>, %19, %cst_14 [1] : vector<8x32xf32> to vector<8xf32>
    %21 = vector.shape_cast %20 : vector<8xf32> to vector<8x1xf32>
    %cst_15 = arith.constant 3.125000e-02 : f32
    %22 = vector.broadcast %cst_15 : f32 to vector<8x1xf32>
    %23 = arith.mulf %21, %22 : vector<8x1xf32>
    %24 = arith.mulf %19, %19 : vector<8x32xf32>
    %cst_16 = arith.constant dense<0.000000e+00> : vector<8xf32>
    %25 = vector.multi_reduction <add>, %24, %cst_16 [1] : vector<8x32xf32> to vector<8xf32>
    %26 = vector.shape_cast %25 : vector<8xf32> to vector<8x1xf32>
    %cst_17 = arith.constant 3.125000e-02 : f32
    %27 = vector.broadcast %cst_17 : f32 to vector<8x1xf32>
    %28 = arith.mulf %26, %27 : vector<8x1xf32>
    %29 = arith.mulf %23, %23 : vector<8x1xf32>
    %30 = arith.subf %28, %29 : vector<8x1xf32>
    %31 = vector.broadcast %23 : vector<8x1xf32> to vector<8x32xf32>
    %32 = arith.subf %19, %31 : vector<8x32xf32>
    %cst_18 = arith.constant 9.99999996E-13 : f32
    %33 = vector.broadcast %cst_18 : f32 to vector<8x1xf32>
    %34 = arith.addf %30, %33 : vector<8x1xf32>
    %35 = math.rsqrt %34 : vector<8x1xf32>
    %36 = vector.broadcast %35 : vector<8x1xf32> to vector<8x32xf32>
    %37 = arith.mulf %32, %36 : vector<8x32xf32>
    %38 = vector.broadcast %15 : vector<1x32xf32> to vector<8x32xf32>
    %39 = arith.mulf %37, %38 : vector<8x32xf32>
    %40 = vector.broadcast %16 : vector<1x32xf32> to vector<8x32xf32>
    %41 = arith.addf %39, %40 : vector<8x32xf32>
    %c0_19 = arith.constant 0 : index
    %c0_20 = arith.constant 0 : index
    %42 = vector.load %arg8[%c0_19, %c0_20] : memref<8x32xf32, #tpu.memory_space<vmem>>, vector<8x32xf32>
    tpu.vector_store %arg8[%c0_19, %c0_20], %41 {strides = array<i32>} : memref<8x32xf32, #tpu.memory_space<vmem>>, vector<8x32xf32>,
    return
  }
  func.func @transform_0(%arg0: i32, %arg1: memref<4x6xi32, #tpu.memory_space<smem>>) -> (i32, i32) {
    %c1 = arith.constant 1 : index
    %0 = arith.index_cast %arg0 : i32 to index
    %1 = memref.load %arg1[%c1, %0] : memref<4x6xi32, #tpu.memory_space<smem>>
    %c0_i32 = arith.constant 0 : i32
    %c0_i32_0 = arith.constant 0 : i32
    return %1, %c0_i32 : i32, i32
  }
  func.func @transform_1(%arg0: i32, %arg1: memref<4x6xi32, #tpu.memory_space<smem>>) -> (i32, i32) {
    %c1 = arith.constant 1 : index
    %0 = arith.index_cast %arg0 : i32 to index
    %1 = memref.load %arg1[%c1, %0] : memref<4x6xi32, #tpu.memory_space<smem>>
    %c0_i32 = arith.constant 0 : i32
    %c0_i32_0 = arith.constant 0 : i32
    return %1, %c0_i32 : i32, i32
  }
  func.func @transform_2(%arg0: i32, %arg1: memref<4x6xi32, #tpu.memory_space<smem>>) -> (i32, i32) {
    %c2 = arith.constant 2 : index
    %0 = arith.index_cast %arg0 : i32 to index
    %1 = memref.load %arg1[%c2, %0] : memref<4x6xi32, #tpu.memory_space<smem>>
    %c0_i32 = arith.constant 0 : i32
    %c0_i32_0 = arith.constant 0 : i32
    return %1, %c0_i32 : i32, i32
  }
  func.func @transform_3(%arg0: i32, %arg1: memref<4x6xi32, #tpu.memory_space<smem>>) -> (i32, i32) {
    %c2 = arith.constant 2 : index
    %0 = arith.index_cast %arg0 : i32 to index
    %1 = memref.load %arg1[%c2, %0] : memref<4x6xi32, #tpu.memory_space<smem>>
    %c0_i32 = arith.constant 0 : i32
    %c0_i32_0 = arith.constant 0 : i32
    return %1, %c0_i32 : i32, i32
  }
  func.func @transform_4(%arg0: i32, %arg1: memref<4x6xi32, #tpu.memory_space<smem>>) -> (i32, i32, i32) {
    %c0 = arith.constant 0 : index
    %0 = arith.index_cast %arg0 : i32 to index
    %1 = memref.load %arg1[%c0, %0] : memref<4x6xi32, #tpu.memory_space<smem>>
    %c0_i32 = arith.constant 0 : i32
    %c0_i32_0 = arith.constant 0 : i32
    %c0_i32_1 = arith.constant 0 : i32
    return %1, %c0_i32, %c0_i32_0 : i32, i32, i32
  }
  func.func @transform_5(%arg0: i32, %arg1: memref<4x6xi32, #tpu.memory_space<smem>>) -> (i32, i32, i32) {
    %c0 = arith.constant 0 : index
    %0 = arith.index_cast %arg0 : i32 to index
    %1 = memref.load %arg1[%c0, %0] : memref<4x6xi32, #tpu.memory_space<smem>>
    %c0_i32 = arith.constant 0 : i32
    %c0_i32_0 = arith.constant 0 : i32
    %c0_i32_1 = arith.constant 0 : i32
    return %1, %c0_i32, %c0_i32_0 : i32, i32, i32
  }
  func.func @transform_6(%arg0: i32, %arg1: memref<4x6xi32, #tpu.memory_space<smem>>) -> (i32, i32) {
    %c3 = arith.constant 3 : index
    %0 = arith.index_cast %arg0 : i32 to index
    %1 = memref.load %arg1[%c3, %0] : memref<4x6xi32, #tpu.memory_space<smem>>
    %c0_i32 = arith.constant 0 : i32
    %c0_i32_0 = arith.constant 0 : i32
    return %1, %c0_i32 : i32, i32
  }
}

</mosaic_0001>

<bundles_post_ra>
// kernel: tpu_custom_call.1
= control target key start
LH: loop header
LB: loop body
LE: loop exit
PB: predicated region body
PF: predicated region fallthrough
CT: control target
= control target key end

     0   :  { %s1368_s27 = smov [#allocation3]   ;;  %s1852_s0 = inlined_call_operand.hbm [shape: s32[4,6], index: 0, kind: input, shape index: {}]   ;;  %s1853_s1 = inlined_call_operand.hbm [shape: f32[32,32], index: 1, kind: input, shape index: {}]   ;;  %s1854_s2 = inlined_call_operand.hbm [shape: f32[32,32], index: 2, kind: input, shape index: {}]   ;;  %s1855_s3 = inlined_call_operand.vmem [shape: f32[16,32], index: 3, kind: input, shape index: {}]   ;;  %s1856_s4 = inlined_call_operand.hbm [shape: f32[16,32], index: 4, kind: input, shape index: {}]   ;;  %s1857_s5 = inlined_call_operand.hbm [shape: f32[2,32,32], index: 5, kind: input, shape index: {}]   ;;  %s1858_s6 = inlined_call_operand.vmem [shape: f32[2,3,32], index: 6, kind: input, shape index: {}]   ;;  %s1859_s7 = inlined_call_operand.vmem [shape: f32[48,32], index: 7, kind: output, shape index: {}]  }
   0x1   :  { %1877 = sst [smem:[#allocation34_spill]] %s1854_s2  ;;  %s13_s26 = sshll.u32 %s1852_s0, 4  ;;  %s14_s26 = int_to_ptr.hbm [resolvable:$true] %s13_s26 }
   0x2   :  { %1878 = sst [smem:[#allocation35_spill]] %s1855_s3 }
   0x3   :  { %1879 = sst [smem:[#allocation36_spill]] %s1856_s4 }
   0x4   :  { %1880 = sst [smem:[#allocation37_spill]] %s1857_s5 }
   0x5   :  { %1881 = sst [smem:[#allocation38_spill]] %s1858_s6 }
   0x6   :  { %1882 = sst [smem:[#allocation39_spill]] %s1859_s7 }
   0x7   :  { %16 = dma.hbm_to_smem %s14_s26, 64, %s1368_s27, [#allocation2] }
   0x8   :  { %1298 = dma.done.wait [#allocation2], 64 }
   0x9   :  { %1299 = vsyncadd [#allocation2], 4294967232 }
   0xa   :  { %19 = sfence }
   0xb   :  { %20 = vsyncpa [#allocation5], 0 }
   0xc   :  { %22 = vsyncpa [#allocation5 + $0x1], 0 }
   0xd   :  { %23 = vsyncpa [#allocation7], 0 }
   0xe   :  { %25 = vsyncpa [#allocation7 + $0x1], 0 }
   0xf   :  { %26 = vsyncpa [#allocation10], 0 }
  0x10   :  { %28 = vsyncpa [#allocation10 + $0x1], 0  ;;  %s1414_s28 = smov 0   ;;  %s1416_s29 = smov 0  }
  0x11   :  { %s1418_s30 = smov 0   ;;  %s1420_s8 = smov 0  }
  0x12   :  { %s1422_s0 = smov 0   ;;  %s1424_s9 = smov 0  }
  0x13   :  { %s1426_s10 = smov 0   ;;  %s1428_s11 = smov 0  }
  0x14   :  { %s1430_s12 = smov 0   ;;  %s1432_s13 = smov 0  }
  0x15   :  { %s1434_s14 = smov 0   ;;  %s1436_s15 = smov 0  }
  0x16   :  { %s1438_s16 = smov 0  }
  0x17 LB: > { %1883 = sst [smem:[#allocation24_spill]] %s1318_s28  ;;  %s1478_s17 = sadd.s32 4294967295, %s1366_s16   ;;  %s1366_s16 = sphi %s1438_s16, %s1952_s16   ;;  %s1362_s15 = sphi %s1436_s15, %s1941_s15   ;;  %s1358_s14 = sphi %s1434_s14, %s1951_s14   ;;  %s1354_s13 = sphi %s1432_s13, %s1950_s13   ;;  %s1350_s12 = sphi %s1430_s12, %s1939_s12   ;;  %s1346_s11 = sphi %s1428_s11, %s1949_s11   ;;  %s1342_s10 = sphi %s1426_s10, %s1948_s10   ;;  %s1338_s9 = sphi %s1424_s9, %s1947_s9   ;;  %s1334_s0 = sphi %s1422_s0, %s1946_s0   ;;  %s1330_s8 = sphi %s1420_s8, %s1945_s8   ;;  %s1326_s30 = sphi %s1418_s30, %s1944_s30   ;;  %s1322_s29 = sphi %s1416_s29, %s1943_s29   ;;  %s1318_s28 = sphi %s1414_s28, %s1942_s28  }
  0x18   : > { %1884 = sst [smem:[#allocation25_spill]] %s1326_s30  ;;  %s1481_s18 = sadd.s32 1, %s1366_s16  }
  0x19   : > { %1885 = sst [smem:[#allocation26_spill]] %s1346_s11  ;;  %s38_s19 = sshra.s32 %s1366_s16, 7 }
  0x1a   : > { %1886 = sst [smem:[#allocation27_spill]] %s1350_s12  ;;  %s1861_s20 = sand.u32 127, %s1366_s16 }
  0x1b   : > { %1887 = sst [smem:[#allocation28_spill]] %s1362_s15  ;;  %s1485_s21 = sshll.u32 %s38_s19, 7 }
  0x1c   : > { %s46_s22 = sshra.s32 %s1481_s18, 7  ;;  %s937_s23 = sadd.s32 128, %s1485_s21 }
  0x1d   : > { %s1489_s24 = sshll.u32 %s46_s22, 7  ;;  %s1493_s25 = sadd.s32 %s937_s23, %s1861_s20 }
  0x1e   : > { %s939_s26 = sadd.s32 128, %s1489_s24  ;;  %s1497_s27 = sld [smem:[#allocation3 + %s1493_s25]] }
  0x1f   : > { %s1860_s19 = sand.u32 127, %s1481_s18  ;;  %p1870_p0 = scmp.eq.s32.totalorder %s1366_s16, 0 }
  0x20   : > { %s52_s7 = sadd.s32 %s939_s26, %s1860_s19  ;;  %p71_p1 = scmp.eq.s32.totalorder %s1478_s17, 0 }
  0x21   : > { %s87_s6 = sld [smem:[#allocation3 + %s1493_s25]]  ;;  %s99_s3 = sadd.s32 1, %s1350_s12 }
  0x22   : > { %s95_s22 = sld [smem:[#allocation3 + %s52_s7]]  ;;  %p106_p2 = scmp.ne.s32.totalorder %s1350_s12, %s1346_s11 }
  0x23   : > { %p112_p3 = scmp.ne.s32.totalorder %s1346_s11, %s1342_s10  ;;  %p1871_p4 = scmp.lt.s32.totalorder %s1366_s16, 6 }
  0x24   : > { %p1512_p5 = por %p106_p2, %p1870_p0  ;;  %s345_s19 = sand.u32 1, %s1366_s16  }
  0x25   : > { %p1518_p6 = por %p112_p3, %p71_p1  ;;  %s347_s20 = sand.u32 1, %s1350_s12  }
  0x26   : > { %s910_s10 = sshll.u32 %s347_s20, 3  ;;  %p1543_p8 = pnand %p1871_p4, %p1512_p5 }
  0x27   : > { %s1889_s26 = scalar_select %p1518_p6, 1, 0 }
  0x28   : > { %s96_s11 = ssub.s32 %s87_s6, %s95_s22  ;;  %s349_s5 = scalar_lea.vmem [#allocation6], %s910_s10 }
  0x29   : > { %1890 = sst [smem:[#allocation29_spill]] %s1889_s26  ;;  %p97_p7 = scmp.eq.s32.totalorder %s96_s11, 0 }
  0x2a   : > { %s1524_s4 = sshll.u32 %s349_s5, 4  ;;  %p919_p9 = scmp.ge.s32.totalorder %s1366_s16, 1 }
  0x2b   : > { %1891 = sst [smem:[#allocation30_spill]] %s1524_s4  ;;  %p452_p10 = scmp.lt.s32.totalorder %s1366_s16, 7 }
  0x2c   : > { %s970_s28 = scalar_select %p1512_p5, [#allocation3], [#allocation12] }
  0x2d   : > { %s1529_s30 = scalar_select %p97_p7, %s1350_s12, %s99_s3  }
  0x2e   : > { %s971_s26 = scalar_select %p1512_p5, %s1493_s25, 0 }
  0x2f   : > { %1892 = sst [smem:[#allocation31_spill]] %s1529_s30  ;;  %s1954_s28 = smov (!%p1871_p4, %s970_s28), [#allocation16] }
  0x30   : > { %s1956_s26 = smov (!%p1871_p4, %s971_s26), 0  ;;  %p1549_p11 = pnand %p919_p9, %p452_p10 }
  0x31   : > { %s357_s6 = sld [smem:[%s1954_s28 + %s1956_s26]]  ;;  %s57_s22 = sadd.s32 1, %s1362_s15 }
  0x32   : > { %s1894_s3 = scalar_select %p1549_p11, 1, 0 }
  0x33   : > { %s53_s11 = sld [smem:[#allocation3 + %s52_s7]]  ;;  %p64_p12 = scmp.ne.s32.totalorder %s1362_s15, %s1358_s14 }
  0x34   : > { %1895 = sst [smem:[#allocation32_spill]] %s1894_s3  ;;  %p70_p13 = scmp.ne.s32.totalorder %s1358_s14, %s1354_s13 }
  0x35   : > { %s1896_s2 = sld [smem:[#allocation34_spill]]  ;;  %p1563_p2 = por %p1870_p0, %p64_p12 }
  0x36   : > { %s1567_s26 = scalar_lea.sflag [#allocation7], %s345_s19  ;;  %p1130_p5 = pneg %p1543_p8 }
  0x37   : > { %s912_s20 = sshll.u32 %s357_s6, 3 }
  0x3b   : > { %s361_s23 = scalar_lea.hbm %s1896_s2, %s912_s20  ;;  %s1133_s20 = scalar_lea.hbm %s1896_s2, 32 }
  0x3c   : > { %s363_s4 = sshll.u32 %s361_s23, 4  ;;  %s364_s4 = int_to_ptr.hbm [resolvable:$true] %s363_s4 }
  0x3d   : > { %s1126_s12 = sshra.s32 %s364_s4, 4  ;;  %s1127_s12 = int_to_ptr.hbm [resolvable:$true] %s1126_s12 }
  0x3e   : > { %s1128_s7 = scalar_lea.hbm %s1127_s12, 8  ;;  %p1134_p10 = scmp.lt.s32.totalorder %s1127_s12, %s1896_s2 }
  0x3f   : > { %p1129_p3 = scmp.ne.s32.totalorder %s1127_s12, %s1128_s7  ;;  %p1135_p12 = scmp.lt.s32.totalorder %s1133_s20, %s1128_s7 }
  0x41   : > { %p1131_p7 = pnand %p1130_p5, %p1129_p3  ;;  %p1136_p0 = por %p1135_p12, %p1134_p10 }
  0x43   : > { %p1132_p9 = pneg %p1131_p7 }
  0x45   : > { %p1137_p4 = pnand %p1136_p0, %p1132_p9 }
  0x47   : > { %1140 = shalt.err (!%p1137_p4)
}
  0x48   : > { %s1898_s19 = sld [smem:[#allocation30_spill]]  ;;  %s54_s12 = ssub.s32 %s1497_s27, %s53_s11 }
  0x49   : > { %p1588_p0 = por %p71_p1, %p70_p13  ;;  %p55_p4 = scmp.eq.s32.totalorder %s54_s12, 0 }
  0x4a   : > { %s318_s7 = sand.u32 1, %s1362_s15   ;;  %p1903_p3 = scmp.lt.s32.totalorder %s1366_s16, 6 }
  0x4b   : > { %s1900_s5 = scalar_select %p1588_p0, 1, 0 }
  0x4c   : > { %s907_s30 = sshll.u32 %s318_s7, 3  ;;  %p1600_p5 = pnand %p1903_p3, %p1563_p2 }
  0x4d   : > { %1901 = sst [smem:[#allocation30_spill]] %s1900_s5  ;;  %s1958_s25 = smov (!%p1563_p2, %s1493_s25), 0 }
  0x4e   : > { %s1899_s3 = int_to_ptr.vmem [resolvable:$true] %s1898_s19  ;;  %p1906_p13 = pmov %p1903_p3 }
  0x4f   : > { %993 = dma.hbm_to_vmem [thread:$0]  (!%p1543_p8), %s364_s4, 128, %s1899_s3, %s1567_s26  }
  0x50   : > { %s1594_s6 = scalar_select %p55_p4, %s1362_s15, %s57_s22  }
  0x51   : > { %s967_s13 = scalar_select %p1563_p2, [#allocation3], [#allocation11] }
  0x52   : > { %1902 = sst [smem:[#allocation33_spill]] %s1594_s6  ;;  %p1905_p8 = pmov %p1903_p3 }
  0x53   : > { %s1962_s25 = smov (!%p1906_p13, %s1958_s25), 0  ;;  %s322_s27 = scalar_lea.vmem [#allocation4], %s907_s30 }
  0x54   : > { %s1960_s13 = smov (!%p1905_p8, %s967_s13), [#allocation15]  ;;  %s1613_s3 = sshll.u32 %s322_s27, 4  ;;  %s339_s3 = int_to_ptr.vmem [resolvable:$true] %s1613_s3 }
  0x55   : > { %s330_s11 = sld [smem:[%s1960_s13 + %s1962_s25]]  ;;  %s949_s22 = sadd.s32 256, %s1485_s21 }
  0x56   : > { %s951_s20 = sadd.s32 256, %s1489_s24  ;;  %s1907_s10 = sand.u32 127, %s1366_s16 }
  0x57   : > { %s1620_s23 = sadd.s32 %s949_s22, %s1907_s10  ;;  %s1908_s28 = sand.u32 127, %s1481_s18 }
  0x58   : > { %s178_s19 = sadd.s32 %s951_s20, %s1908_s28  ;;  %s171_s2 = sld [smem:[#allocation3 + %s1620_s23]] }
  0x59   : > { %s179_s27 = sld [smem:[#allocation3 + %s178_s19]]  ;;  %p190_p2 = scmp.ne.s32.totalorder %s1338_s9, %s1334_s0 }
  0x5a   : > { %s319_s25 = scalar_lea.sflag [#allocation5], %s318_s7  ;;  %p1160_p9 = pneg %p1600_p5 }
  0x5b   : > { %s909_s12 = sshll.u32 %s330_s11, 3  ;;  %s1163_s22 = scalar_lea.hbm %s1853_s1, 32 }
  0x5c   : > { %s334_s30 = scalar_lea.hbm %s1853_s1, %s909_s12 }
  0x5d   : > { %s336_s5 = sshll.u32 %s334_s30, 4  ;;  %s337_s5 = int_to_ptr.hbm [resolvable:$true] %s336_s5 }
  0x5e   : > { %s1156_s21 = sshra.s32 %s337_s5, 4  ;;  %s1157_s21 = int_to_ptr.hbm [resolvable:$true] %s1156_s21 }
  0x5f   : > { %s1158_s24 = scalar_lea.hbm %s1157_s21, 8  ;;  %p1164_p4 = scmp.lt.s32.totalorder %s1157_s21, %s1853_s1 }
  0x60   : > { %p1159_p7 = scmp.ne.s32.totalorder %s1157_s21, %s1158_s24  ;;  %p1165_p3 = scmp.lt.s32.totalorder %s1163_s22, %s1158_s24 }
  0x62   : > { %p1161_p10 = pnand %p1160_p9, %p1159_p7  ;;  %p1166_p8 = por %p1165_p3, %p1164_p4 }
  0x64   : > { %p1162_p12 = pneg %p1161_p10 }
  0x66   : > { %p1167_p13 = pnand %p1166_p8, %p1162_p12 }
  0x68   : > { %1170 = shalt.err (!%p1167_p13)
}
  0x69   : > { %988 = dma.hbm_to_vmem [thread:$0]  (!%p1600_p5), %s337_s5, 128, %s339_s3, %s319_s25  }
  0x6a   : > { %s183_s7 = sadd.s32 1, %s1338_s9  ;;  %p196_p7 = scmp.ne.s32.totalorder %s1334_s0, %s1330_s8 }
  0x6b   : > { %p1909_p9 = scmp.eq.s32.totalorder %s1366_s16, 0  ;;  %s397_s6 = sand.u32 1, %s1338_s9  }
  0x6c   : > { %s1910_s4 = sld [smem:[#allocation25_spill]]  ;;  %s180_s10 = ssub.s32 %s171_s2, %s179_s27 }
  0x6d   : > { %p192_p10 = por %p190_p2, %p1909_p9  ;;  %s1911_s28 = sld [smem:[#allocation24_spill]] }
  0x6e   : > { %p1651_p12 = por %p196_p7, %p71_p1  ;;  %p181_p4 = scmp.eq.s32.totalorder %s180_s10, 0 }
  0x6f   : > { %s913_s5 = sshll.u32 %s397_s6, 3  ;;  %p1913_p5 = scmp.lt.s32.totalorder %s1366_s16, 6 }
  0x70   : > { %s1912_s19 = scalar_select %p1651_p12, 1, 0 }
  0x71   : > { %p1657_p3 = pnand %p1913_p5, %p192_p10  ;;  %s1964_s23 = smov (!%p192_p10, %s1620_s23), 0 }
  0x72   : > { %s1662_s3 = scalar_select %p181_p4, %s1338_s9, %s183_s7  }
  0x73   : > { %s973_s12 = scalar_select %p192_p10, [#allocation3], [#allocation13] }
  0x74   : > { %p1915_p2 = pmov %p1913_p5  ;;  %s399_s30 = scalar_lea.vmem [#allocation8], %s913_s5 }
  0x75   : > { %s415_s27 = sshll.u32 %s399_s30, 4  ;;  %s206_s25 = sld [smem:[#allocation3 + %s1366_s16]]  ;;  %s416_s27 = int_to_ptr.vmem [resolvable:$true] %s415_s27 }
  0x76   : > { %s1966_s12 = smov (!%p1915_p2, %s973_s12), [#allocation17]  ;;  %p1916_p8 = pmov %p1915_p2 }
  0x77   : > { %s207_s21 = sld [smem:[#allocation3 + %s1481_s18]]  ;;  %p218_p13 = scmp.ne.s32.totalorder %s1910_s4, %s1322_s29 }
  0x78   : > { %s1968_s23 = smov (!%p1916_p8, %s1964_s23), 0  ;;  %p224_p7 = scmp.ne.s32.totalorder %s1322_s29, %s1911_s28 }
  0x79   : > { %s407_s2 = sld [smem:[%s1966_s12 + %s1968_s23]]  ;;  %s422_s15 = sand.u32 1, %s1910_s4  }
  0x7a   : > { %s1917_s22 = sld [smem:[#allocation36_spill]]  ;;  %p1681_p9 = por %p224_p7, %p71_p1 }
  0x7b   : > { %p1919_p10 = scmp.eq.s32.totalorder %s1366_s16, 0  ;;  %p1190_p2 = pneg %p1657_p3 }
  0x7d   : > { %p1687_p4 = por %p218_p13, %p1919_p10 }
  0x7f   : > { %s915_s24 = sshll.u32 %s407_s2, 3 }
  0x80   : > { %s411_s20 = scalar_lea.hbm %s1917_s22, %s915_s24  ;;  %s1193_s2 = scalar_lea.hbm %s1917_s22, 16 }
  0x81   : > { %s413_s7 = sshll.u32 %s411_s20, 4  ;;  %s414_s7 = int_to_ptr.hbm [resolvable:$true] %s413_s7 }
  0x82   : > { %s1186_s10 = sshra.s32 %s414_s7, 4  ;;  %s1187_s10 = int_to_ptr.hbm [resolvable:$true] %s1186_s10 }
  0x83   : > { %s1188_s28 = scalar_lea.hbm %s1187_s10, 8  ;;  %p1194_p1 = scmp.lt.s32.totalorder %s1187_s10, %s1917_s22 }
  0x84   : > { %p1189_p5 = scmp.ne.s32.totalorder %s1187_s10, %s1188_s28  ;;  %p1195_p13 = scmp.lt.s32.totalorder %s1193_s2, %s1188_s28 }
  0x86   : > { %p1191_p8 = pnand %p1190_p2, %p1189_p5  ;;  %p1196_p7 = por %p1195_p13, %p1194_p1 }
  0x88   : > { %p1192_p12 = pneg %p1191_p8 }
  0x8a   : > { %p1197_p10 = pnand %p1196_p7, %p1192_p12 }
  0x8c   : > { %1200 = shalt.err (!%p1197_p10)
}
  0x8d   : > { %998 = dma.hbm_to_vmem [thread:$0]  (!%p1657_p3), %s414_s7, 128, %s416_s27, %s1567_s26  }
  0x8e   : > { %s208_s13 = ssub.s32 %s206_s25, %s207_s21  ;;  %s211_s11 = sadd.s32 1, %s1910_s4 }
  0x8f   : > { %p209_p5 = scmp.eq.s32.totalorder %s208_s13, 0  ;;  %s916_s20 = sshll.u32 %s422_s15, 5 }
  0x90   : > { %s976_s8 = scalar_select %p1687_p4, [#allocation3], [#allocation14] }
  0x91   : > { %s1708_s10 = scalar_select %p209_p5, %s1910_s4, %s211_s11  }
  0x92   : > { %s977_s28 = scalar_select %p1687_p4, %s1366_s16, 0 }
  0x93   : > { %p1921_p12 = scmp.lt.s32.totalorder %s1366_s16, 6  ;;  %s426_s25 = scalar_lea.vmem [#allocation9], %s916_s20 }
  0x94   : > { %s435_s21 = sshll.u32 %s426_s25, 4  ;;  %s1925_s2 = sld [smem:[#allocation37_spill]]  ;;  %s436_s21 = int_to_ptr.vmem [resolvable:$true] %s435_s21 }
  0x95   : > { %s1970_s8 = smov (!%p1921_p12, %s976_s8), [#allocation18]  ;;  %p1922_p2 = pmov %p1921_p12 }
  0x96   : > { %s423_s13 = scalar_lea.sflag [#allocation10], %s422_s15 }
  0x97   : > { %s1972_s28 = smov (!%p1922_p2, %s977_s28), 0  ;;  %p1923_p8 = pmov %p1922_p2 }
  0x98   : > { %s427_s27 = sld [smem:[%s1970_s8 + %s1972_s28]] }
  0x99   : > { %p1721_p1 = pnand %p1923_p8, %p1687_p4 }
  0x9a   : > { %s1223_s8 = scalar_lea.hbm %s1925_s2, 64 }
  0x9b   : > { %p1220_p4 = pneg %p1721_p1 }
  0x9e   : > { %s962_s7 = sshll.u32 %s427_s27, 5 }
  0x9f   : > { %s432_s30 = scalar_lea.hbm %s1925_s2, %s962_s7 }
  0xa0   : > { %s433_s24 = sshll.u32 %s432_s30, 4  ;;  %s434_s24 = int_to_ptr.hbm [resolvable:$true] %s433_s24 }
  0xa1   : > { %s1216_s23 = sshra.s32 %s434_s24, 4  ;;  %s1217_s23 = int_to_ptr.hbm [resolvable:$true] %s1216_s23 }
  0xa2   : > { %s1218_s16 = scalar_lea.hbm %s1217_s23, 32  ;;  %p1224_p10 = scmp.lt.s32.totalorder %s1217_s23, %s1925_s2 }
  0xa3   : > { %p1219_p3 = scmp.ne.s32.totalorder %s1217_s23, %s1218_s16  ;;  %p1225_p5 = scmp.lt.s32.totalorder %s1223_s8, %s1218_s16 }
  0xa5   : > { %p1221_p13 = pnand %p1220_p4, %p1219_p3  ;;  %p1226_p12 = por %p1225_p5, %p1224_p10 }
  0xa7   : > { %p1222_p7 = pneg %p1221_p13 }
  0xa9   : > { %p1227_p2 = pnand %p1226_p12, %p1222_p7 }
  0xab   : > { %1230 = shalt.err (!%p1227_p2)
}
  0xac   : > { %s1369_s4 = smov 128   ;;  %s1370_s15 = smov 8  }
  0xad   : > { %1003 = dma.hbm_to_vmem [thread:$0]  (!%p1721_p1), %s434_s24, 512, %s436_s21, %s423_s13, %s1369_s4, %s1369_s4, %s1370_s15  }
  0xae   : > { %456 = sbr.rel (%p1549_p11) target bundleno = 501 (0x1f5), region = 44  ;;  %s458_s5 = sand.u32 (!%p1549_p11), 1, %s1358_s14  }
  0xaf   : > { %s1743_s12 = sshll.u32 (!%p1549_p11), %s458_s5, 3  ;;  %s459_s30 = scalar_lea.sflag (!%p1549_p11), [#allocation5], %s458_s5 }
  0xb0   : > { %s462_s23 = scalar_lea.vmem (!%p1549_p11), [#allocation4], %s1743_s12 }
  0xb3   : > { %1301 = dma.done.wait (%p1588_p0), %s459_s30, 128  }
  0xb4   : > { %1303 = vsyncadd (%p1588_p0), %s459_s30, 4294967168  ;;  %s1928_s16 = sld [smem:[#allocation26_spill]]  ;;  %s468_s21 = sand.u32 1, %s1478_s17  }
  0xb5   : > { %s469_s11 = scalar_lea.sflag [#allocation7], %s468_s21 }
  0xba   : > { %s470_s24 = sand.u32 1, %s1928_s16  }
  0xbb   : > { %s1752_s13 = sshll.u32 %s470_s24, 3 }
  0xbc   : > { %s472_s20 = scalar_lea.vmem [#allocation6], %s1752_s13 }
  0xbd   : > { %1305 = dma.done.wait (%p1518_p6), %s469_s11, 128  }
  0xbe   : > { %1307 = vsyncadd (%p1518_p6), %s469_s11, 4294967168  ;;  %s480_s8 = sand.u32 1, %s1334_s0   ;;  %p1930_p11 = scmp.ne.s32.totalorder %s1912_s19, 0 }
  0xbf   : > { %s1760_s28 = sshll.u32 %s480_s8, 3 }
  0xc0   : > { %s482_s27 = scalar_lea.vmem [#allocation8], %s1760_s28 }
  0xc1   : > { %1309 = dma.done.wait (%p1930_p11), %s469_s11, 128  }
  0xc2   : > { %1311 = vsyncadd (%p1930_p11), %s469_s11, 4294967168  ;;  %s488_s4 = sand.u32 1, %s1322_s29  }
  0xc3   : > { %s923_s15 = sshll.u32 %s488_s4, 5  ;;  %s489_s25 = scalar_lea.sflag [#allocation10], %s488_s4 }
  0xc4   : > { %s492_s7 = scalar_lea.vmem [#allocation9], %s923_s15 }
  0xc5   : > { %1313 = dma.done.wait (%p1681_p9), %s489_s25, 512  }
  0xc6   : > { %1315 = vsyncadd (%p1681_p9), %s489_s25, 4294966784  ;;  %s577_s5 = sshra.s32 %s1478_s17, 7  ;;  %s582_s30 = sand.u32 127, %s1478_s17  ;;  %vm649_vm0 = vcmask 261120   ;;  %v646_v0 = vld [vmem:[%s492_s7 + $0x18] sm:$0xff]  ;;  %v645_v1 = vld [vmem:[%s492_s7 + $0x10] sm:$0xff] }
  0xc7   : > { %s963_s16 = sshll.u32 %s577_s5, 7  ;;  %s632_s26 = sld [smem:[#allocation3 + %s1478_s17]]  ;;  %929 = vmatpush.xpose.msk.msra.mxu0 %vm649_vm0, %v646_v0  ;;  %v644_v2 = vld [vmem:[%s492_s7 + $0x8] sm:$0xff]  ;;  %v643_v4 = vld [vmem:[%s492_s7] sm:$0xff]  ;;  %v634_v5 = vld [vmem:[%s462_s23] sm:$0xff] }
  0xc8   : > { %s964_s19 = sadd.s32 256, %s963_s16  ;;  %s966_s21 = sadd.s32 384, %s963_s16  ;;  %v640_v10 = vld [vmem:[%s472_s20] sm:$0xff]  ;;  %v641_v11 = vld [vmem:[%s482_s27] sm:$0xff] }
  0xc9   : > { %s583_s24 = sadd.s32 %s964_s19, %s582_s30  ;;  %s1775_s11 = sadd.s32 %s966_s21, %s582_s30 }
  0xca   : > { %s584_s8 = sld [smem:[#allocation3 + %s583_s24]] }
  0xcb   : > { %930 = vmatpush.xpose.msk.msra.mxu0 %vm649_vm0, %v645_v1  ;;  %s1931_s5 = sld [smem:[#allocation35_spill]] }
  0xcc   : > { %s606_s16 = sld [smem:[#allocation3 + %s1478_s17]] }
  0xcd   : > { %p633_p6 = scmp.eq.s32.totalorder %s632_s26, 0  ;;  %s1934_s12 = sld [smem:[#allocation38_spill]] }
  0xce   : > { %s619_s17 = sld [smem:[#allocation3 + %s1775_s11]] }
  0xcf   : > { %s636_s6 = scalar_select %p633_p6, 1, 0  ;;  %931 = vmatpush.xpose.msk.msra.mxu0 %vm649_vm0, %v644_v2 }
  0xd0   : > { %p585_p0 = scmp.lt.s32.totalorder %s584_s8, 1  ;;  %s1935_s27 = sld [smem:[#allocation39_spill]] }
  0xd1   : > { %v637_v3 = vstv %s636_s6 }
  0xd2   : > { %s1974_s8 = smov (!%p585_p0, %s584_s8), 1  ;;  %vm1785_vm1 = vcmp.eq.s32.totalorder %v637_v3, 1  ;;  %p607_p9 = scmp.lt.s32.totalorder %s606_s16, 1 }
  0xd3   : > { %s925_s4 = sshll.u32 %s1974_s8, 3  ;;  %932 = vmatpush.xpose.msk.msra.mxu0 %vm649_vm0, %v643_v4  ;;  %v642_v13 = vsel %vm1785_vm1, %v640_v10, %v641_v11 }
  0xd4   : > { %s588_s30 = scalar_lea.vmem %s1931_s5, %s925_s4  ;;  %s1976_s16 = smov (!%p607_p9, %s606_s16), 1 }
  0xd5   : > { %v635_v6 = vld [vmem:[%s588_s30] sm:$0xff]  ;;  %s926_s26 = sshll.u32 %s1976_s16, 2  ;;  %p620_p8 = scmp.lt.s32.totalorder %s619_s17, 5 }
  0xd6   : > { %v639_v8 = vsel %vm1785_vm1, %v634_v5, %v635_v6  ;;  %s610_s23 = scalar_lea.vmem %s1934_s12, %s926_s26 }
  0xd7   : > { %933 = vmatmul.msk.f32.vlgmr.msra.gmra.mxu0 %vm649_vm0, %v639_v8  ;;  %v647_v9 = vld [vmem:[%s610_s23] sm:$0x7]  ;;  %s1978_s17 = smov (!%p620_p8, %s619_s17), 5 }
  0xd8   : > { %v648_v12 = vperm.slane %v647_v9, 0  ;;  %v710_v33 = vperm.slane %v647_v9, 1  ;;  %s928_s13 = sshll.u32 %s1978_s17, 3  ;;  %v712_v36 = vperm.slane %v647_v9, 2 }
  0xd9   : > { %s623_s21 = scalar_lea.vmem %s1935_s27, %s928_s13 }
 0x154   : > { %v682_v14 = vpop.f32.mrf.mxu0 }
 0x155   : > { %v683_v15 = vadd.f32 %v682_v14, %v648_v12 }
 0x157   : > { %v685_v16 = vadd.f32 %v683_v15, %v642_v13 }
 0x159   : > { %v686_v17 = vsel %vm649_vm0, %v685_v16, 0.0  ;;  %v690_v18 = vmul.f32 %v685_v16, %v685_v16 }
 0x15a   : > { %687 = vadd.xlane.f32.xlu0 %v686_v17 }
 0x15b   : > { %v691_v19 = vsel %vm649_vm0, %v690_v18, 0.0 }
 0x162   : > { %692 = vadd.xlane.f32.xlu0 %v691_v19 }
 0x1cd   : > { %v688_v20 = vpop.xlane.xlu0 %687 }
 0x1ce   : > { %v689_v21 = vmul.f32 0.03125, %v688_v20 }
 0x1d0   : > { %v695_v23 = vmul.f32 %v689_v21, %v689_v21  ;;  %v697_v34 = vsub.f32 %v685_v16, %v689_v21 }
 0x1d5   : > { %v693_v22 = vpop.xlane.xlu0 %692 }
 0x1d6   : > { %v694_v24 = vmul.f32 0.03125, %v693_v22 }
 0x1d8   : > { %v696_v25 = vsub.f32 %v694_v24, %v695_v23 }
 0x1da   : > { %v698_v26 = vadd.f32 1e-12, %v696_v25 }
 0x1dc   : > { %1112 = vrsqrt.f32 %v698_v26  ;;  %vm705_vm3 = vweird.f32 %v698_v26 }
 0x1e2   : > { %v1113_v27 = vpop.eup %1112 }
 0x1e3   : > { %v700_v28 = vmul.f32 %v1113_v27, %v698_v26  ;;  %vm706_vm2 = vweird.f32 %v1113_v27 }
 0x1e4   : > { %vm707_vm4 = vmor %vm705_vm3, %vm706_vm2 }
 0x1e5   : > { %v701_v29 = vmul.f32 %v1113_v27, %v700_v28 }
 0x1e7   : > { %v702_v30 = vmul.f32 0.5, %v701_v29 }
 0x1e9   : > { %v703_v31 = vsub.f32 1.5, %v702_v30 }
 0x1eb   : > { %v704_v32 = vmul.f32 %v1113_v27, %v703_v31 }
 0x1ed   : > { %v708_v35 = vsel %vm707_vm4, %v1113_v27, %v704_v32 }
 0x1ee   : > { %v709_v37 = vmul.f32 %v708_v35, %v697_v34 }
 0x1f0   : > { %v711_v38 = vmul.f32 %v710_v33, %v709_v37 }
 0x1f2   : > { %v713_v39 = vadd.f32 %v712_v36, %v711_v38 }
 0x1f4   : > { %714 = vst.msk [vmem:[%s623_s21] sm:$0xff] %vm649_vm0, %v713_v39 }
 0x1f5 PF: > { %s1936_s24 = sld [smem:[#allocation25_spill]]  ;;  %p31_p1 = scmp.ge.s32.totalorder %s1481_s18, 8  }
 0x1f6   : > { %s1937_s11 = sld [smem:[#allocation26_spill]]  ;;  %s1942_s28 = smov %s1322_s29 }
 0x1f7   : > { %s1938_s6 = sld [smem:[#allocation27_spill]]  ;;  %s1944_s30 = smov %s1708_s10 }
 0x1f8   : > { %s1939_s12 = sld [smem:[#allocation31_spill]]  ;;  %s1945_s8 = smov %s1334_s0 }
 0x1f9   : > { %s1940_s4 = sld [smem:[#allocation28_spill]]  ;;  %s1946_s0 = smov %s1338_s9 }
 0x1fa   : > { %s1941_s15 = sld [smem:[#allocation33_spill]]  ;;  %s1947_s9 = smov %s1662_s3 }
 0x1fb   : > { %s1943_s29 = smov %s1936_s24  ;;  %s1950_s13 = smov %s1358_s14 }
 0x1fc   : > { %s1948_s10 = smov %s1937_s11  ;;  %s1952_s16 = smov %s1481_s18 }
 0x1fd   : > { %s1949_s11 = smov %s1938_s6  ;;  %33 = sbr.rel (!%p31_p1) target bundleno = 23 (0x17), region = 127 }
 0x1ff   : > { %s1951_s14 = smov %s1940_s4 }
 0x202   :  { %758 = vsyncpa [#allocation5], 1 }
 0x203   :  { %760 = vsyncpa [#allocation5 + $0x1], 1 }
 0x204   :  { %761 = vsyncpa [#allocation7], 1 }
 0x205   :  { %763 = vsyncpa [#allocation7 + $0x1], 1 }
 0x206   :  { %764 = vsyncpa [#allocation10], 1 }
 0x207   :  { %766 = vsyncpa [#allocation10 + $0x1], 1 }

</bundles_post_ra>
